<compile_context>
chip_gen: v5e
topology: v5e:2x2
jax: 0.10.0
libtpu: 0.0.40
codegen_flags: <defaults>
</compile_context>

<pallas_src>
import math
import functools

import jax
import jax.numpy as jnp
from jax import lax
from jax.experimental import pallas as pl
from jax.experimental.pallas import tpu as pltpu


def _attention_kernel(q_ref, kt_ref, *rest, scale, has_m1, has_m2,
                      ns_valid, ns_pad):
    # q_ref: (TB, TNT, E), kt_ref: (TB, E, NSP)
    # optional m1/m2: (TB, TNT, NSP), o_ref: (TB, TNT, NSP)
    refs = list(rest)
    m1_ref = refs.pop(0) if has_m1 else None
    m2_ref = refs.pop(0) if has_m2 else None
    (o_ref,) = refs

    q = q_ref[...]        # native dtype straight into the MXU
    kt = kt_ref[...]

    # Batched [M,K]x[K,N]: contract E, batch over TB.  f32 accumulation.
    scores = lax.dot_general(
        q, kt,
        dimension_numbers=(((2,), (1,)), ((0,), (0,))),
        preferred_element_type=jnp.float32,
    )                                               # (TB, TNT, NSP)
    scores = scores * scale                         # scale f32 scores (one VPU mul)

    if has_m1:                                      # baddbmm: + attn_mask
        scores = scores + m1_ref[...].astype(jnp.float32)

    if ns_valid < ns_pad:                           # static: lane-padding columns
        col = lax.broadcasted_iota(jnp.int32, scores.shape, scores.ndim - 1)
        scores = jnp.where(col < ns_valid, scores, jnp.float32(-1e30))

    # Numerically stable softmax over the last dim.
    s_max = jnp.max(scores, axis=-1, keepdims=True)
    p = jnp.exp(scores - s_max)
    p = p * pl.reciprocal(jnp.sum(p, axis=-1, keepdims=True), approx=True)

    if has_m2:                                      # relu(attn + attn_mask_2)
        p = jnp.maximum(p + m2_ref[...].astype(jnp.float32), 0.0)

    # TODO(synk): dropout_rate > 0 would need pltpu.prng_seed/prng_random_bits
    # based masking; the module default (0.0) is a no-op and is omitted.
    o_ref[...] = p.astype(o_ref.dtype)


def attention(q, k, attn_mask=None, attn_mask_2=None, dropout_rate: float = 0.0):
    """Pallas TPU forward of NAIM Attention (dropout_rate must be 0)."""
    assert dropout_rate == 0.0, "dropout not implemented (module default is 0.0)"
    B, Nt, E = q.shape
    Bk, Ns, Ek = k.shape
    assert B == Bk and E == Ek

    has_m1 = attn_mask is not None
    has_m2 = attn_mask_2 is not None
    out_dtype = q.dtype
    itemsize = jnp.dtype(q.dtype).itemsize
    m1_item = jnp.dtype(attn_mask.dtype).itemsize if has_m1 else 0
    m2_item = jnp.dtype(attn_mask_2.dtype).itemsize if has_m2 else 0

    # Lane-dense output / mask / K blocks: pad Ns up to a multiple of 128.
    ns_pad = pl.cdiv(Ns, 128) * 128

    # Packed sublane tile for the input dtype (rows per packed vreg tile).
    pack = {4: 8, 2: 16, 1: 32}.get(itemsize, 8)

    # --- per-generation VMEM budgeting -------------------------------------
    try:
        info = pltpu.get_tpu_info()
        vmem_phys = getattr(info, "vmem_capacity_bytes", 64 * 1024 * 1024)
    except Exception:  # pragma: no cover - conservative fallback (v7x-sized)
        vmem_phys = 64 * 1024 * 1024
    if vmem_phys >= 128 * 1024 * 1024:      # v5e / v6e
        vmem_limit = 64 * 1024 * 1024
        tile_nt_cap = 512
    else:                                   # v7x (64 MiB physical)
        vmem_limit = 40 * 1024 * 1024
        tile_nt_cap = 256
    budget = vmem_limit - 4 * 1024 * 1024   # headroom for internal scratch

    def block_bytes(tb, tnt):
        b = 2 * tb * tnt * E * itemsize               # q   (double-buffered)
        b += 2 * tb * E * ns_pad * itemsize           # K^T (double-buffered)
        if has_m1:
            b += 2 * tb * tnt * ns_pad * m1_item      # mask1
        if has_m2:
            b += 2 * tb * tnt * ns_pad * m2_item      # mask2
        b += 2 * tb * tnt * ns_pad * itemsize         # out (double-buffered)
        b += 3 * tb * tnt * ns_pad * 4                # live f32 intermediates
        return b

    nt_aligned = pl.cdiv(Nt, pack) * pack
    tile_nt = min(tile_nt_cap, nt_aligned)
    tile_nt = max(pack, (tile_nt // pack) * pack)
    while block_bytes(1, tile_nt) > budget and tile_nt > pack:
        tile_nt = max(pack, ((tile_nt // 2) // pack) * pack)

    # Largest batch tile (divisor of B, capped) that fits the VMEM budget.
    tile_b = 1
    for d in range(min(B, 64), 0, -1):
        if B % d == 0 and block_bytes(d, tile_nt) <= budget:
            tile_b = d
            break

    nt_pad = pl.cdiv(Nt, tile_nt) * tile_nt
    grid_b = B // tile_b
    grid_t = nt_pad // tile_nt
    if grid_b * grid_t == 1 and B >= 2:
        # Keep >=2 parallel blocks (v7x has 2 TensorCores); split on batch so
        # each core's sub-grid keeps its own K block resident.
        for d in range(B // 2, 0, -1):
            if B % d == 0:
                tile_b = d
                break
        grid_b = B // tile_b

    # TODO(synk): for very large Ns a third grid axis over Ns with an online
    # softmax would be needed; Nt/batch tiling alone covers typical NAIM
    # (tabular) sequence lengths.

    # --- prepare operands ----------------------------------------------------
    pad_t = nt_pad - Nt
    pad_s = ns_pad - Ns
    if pad_t:
        q = jnp.pad(q, ((0, 0), (0, pad_t), (0, 0)))
    kt = jnp.swapaxes(k, 1, 2)                     # (B, E, Ns): Ns on lanes
    if pad_s:
        kt = jnp.pad(kt, ((0, 0), (0, 0), (0, pad_s)))

    inputs = [q, kt]
    in_specs = [
        pl.BlockSpec((tile_b, tile_nt, E), lambda b, t: (b, t, 0)),
        # K^T stays resident across the Nt grid axis (index_map ignores t).
        pl.BlockSpec((tile_b, E, ns_pad), lambda b, t: (b, 0, 0)),
    ]
    bytes_accessed = q.size * itemsize + kt.size * itemsize
    for m in (attn_mask, attn_mask_2):
        if m is not None:
            if pad_t or pad_s:
                # TODO(synk): for large, misaligned Ns a tail-block / masked-store
                # path would avoid this pad copy; negligible at NAIM scale.
                m = jnp.pad(m, ((0, 0), (0, pad_t), (0, pad_s)))
            inputs.append(m)
            in_specs.append(
                pl.BlockSpec((tile_b, tile_nt, ns_pad), lambda b, t: (b, t, 0))
            )
            bytes_accessed += m.size * jnp.dtype(m.dtype).itemsize
    bytes_accessed += B * nt_pad * ns_pad * itemsize   # output

    kernel = functools.partial(
        _attention_kernel,
        scale=1.0 / math.sqrt(E),
        has_m1=has_m1,
        has_m2=has_m2,
        ns_valid=Ns,
        ns_pad=ns_pad,
    )

    cost = pl.CostEstimate(
        flops=2 * B * nt_pad * ns_pad * E + 5 * B * nt_pad * ns_pad,
        transcendentals=B * nt_pad * ns_pad,
        bytes_accessed=int(bytes_accessed),
    )

    out = pl.pallas_call(
        kernel,
        out_shape=jax.ShapeDtypeStruct((B, nt_pad, ns_pad), out_dtype),
        grid=(grid_b, grid_t),
        in_specs=in_specs,
        out_specs=pl.BlockSpec((tile_b, tile_nt, ns_pad), lambda b, t: (b, t, 0)),
        compiler_params=pltpu.CompilerParams(
            dimension_semantics=("parallel", "parallel"),
            vmem_limit_bytes=vmem_limit,
        ),
        cost_estimate=cost,
    )(*inputs)

    if pad_t or pad_s:
        out = out[:, :Nt, :Ns]
    return out


def _reference(q, k, attn_mask, attn_mask_2):
    B, Nt, E = q.shape
    attn = jnp.einsum("bte,bse->bts", q / math.sqrt(E), k)
    if attn_mask is not None:
        attn = attn + attn_mask
    attn = jax.nn.softmax(attn, axis=-1)
    if attn_mask_2 is not None:
        attn = jnp.maximum(attn + attn_mask_2, 0.0)
    return attn


if __name__ == "__main__":
    key = jax.random.PRNGKey(0)
    kq, kk, km1, km2 = jax.random.split(key, 4)

    B, Nt, Ns, E = 2, 8, 8, 32
    q = jax.random.normal(kq, (B, Nt, E), dtype=jnp.float32)
    k = jax.random.normal(kk, (B, Ns, E), dtype=jnp.float32)
    attn_mask = jnp.where(
        jax.random.bernoulli(km1, 0.2, (B, Nt, Ns)), -1e9, 0.0
    ).astype(jnp.float32)
    attn_mask_2 = jnp.where(
        jax.random.bernoulli(km2, 0.2, (B, Nt, Ns)), -1.0, 0.0
    ).astype(jnp.float32)

    # Masked path (baddbmm + softmax + relu(+mask2)).
    out = jax.block_until_ready(attention(q, k, attn_mask, attn_mask_2))
    ref = _reference(q, k, attn_mask, attn_mask_2)
    assert out.shape == (B, Nt, Ns)
    # approx reciprocal -> ~1e-3 relative error on probabilities.
    assert jnp.allclose(out, ref, atol=5e-3, rtol=5e-3), (
        float(jnp.max(jnp.abs(out - ref)))
    )

    # Unmasked path (no zero-mask materialization, fewer HBM streams).
    out_nm = jax.block_until_ready(attention(q, k))
    ref_nm = _reference(q, k, None, None)
    assert jnp.allclose(out_nm, ref_nm, atol=5e-3, rtol=5e-3), (
        float(jnp.max(jnp.abs(out_nm - ref_nm)))
    )

    print("KERNEL_OK")
</pallas_src>

<mosaic_0001>
module attributes {stable_mosaic.version = 11 : i64} {
  func.func @_attention_kernel(%arg0: i32, %arg1: i32, %arg2: memref<1x8x32xf32, #tpu.memory_space<vmem>>, %arg3: memref<1x32x128xf32, #tpu.memory_space<vmem>>, %arg4: memref<1x8x128xf32, #tpu.memory_space<vmem>>, %arg5: memref<1x8x128xf32, #tpu.memory_space<vmem>>, %arg6: memref<1x8x128xf32, #tpu.memory_space<vmem>>) attributes {dimension_semantics = [#tpu.dimension_semantics<parallel>, #tpu.dimension_semantics<parallel>], iteration_bounds = array<i64: 2, 1>, scalar_prefetch = 0 : i64, scratch_operands = 0 : i64, tpu.core_type = #tpu.core_type<tc>, window_params = [{transform_indices = @transform_0, window_bounds = array<i64: 1, 8, 32>}, {transform_indices = @transform_1, window_bounds = array<i64: 1, 32, 128>}, {transform_indices = @transform_2, window_bounds = array<i64: 1, 8, 128>}, {transform_indices = @transform_3, window_bounds = array<i64: 1, 8, 128>}, {transform_indices = @transform_4, window_bounds = array<i64: 1, 8, 128>}]} {
    %c0 = arith.constant 0 : index
    %c0_0 = arith.constant 0 : index
    %c0_1 = arith.constant 0 : index
    %0 = vector.load %arg2[%c0, %c0_0, %c0_1] : memref<1x8x32xf32, #tpu.memory_space<vmem>>, vector<1x8x32xf32>
    %c0_2 = arith.constant 0 : index
    %c0_3 = arith.constant 0 : index
    %c0_4 = arith.constant 0 : index
    %1 = vector.load %arg3[%c0_2, %c0_3, %c0_4] : memref<1x32x128xf32, #tpu.memory_space<vmem>>, vector<1x32x128xf32>
    %cst = arith.constant dense<0.000000e+00> : vector<1x8x128xf32>
    %2 = tpu.matmul %0, %1, %cst {dimension_numbers = #tpu.dot_dimension_numbers<[2], [1], [1], [2], [0, 0, 0, 1, 1, 2], [0], [0]>} : vector<1x8x32xf32>, vector<1x32x128xf32>, vector<1x8x128xf32> -> vector<1x8x128xf32>
    %cst_5 = arith.constant 0.176776692 : f32
    %3 = vector.broadcast %cst_5 : f32 to vector<1x8x128xf32>
    %4 = arith.mulf %2, %3 : vector<1x8x128xf32>
    %c0_6 = arith.constant 0 : index
    %c0_7 = arith.constant 0 : index
    %c0_8 = arith.constant 0 : index
    %5 = vector.load %arg4[%c0_6, %c0_7, %c0_8] : memref<1x8x128xf32, #tpu.memory_space<vmem>>, vector<1x8x128xf32>
    %6 = arith.addf %4, %5 : vector<1x8x128xf32>
    %7 = tpu.iota {dimensions = array<i32: 2>} : vector<1x8x128xi32>
    %c8_i32 = arith.constant 8 : i32
    %8 = vector.broadcast %c8_i32 : i32 to vector<1x8x128xi32>
    %9 = arith.cmpi slt, %7, %8 : vector<1x8x128xi32>
    %cst_9 = arith.constant -1.000000e+30 : f32
    %10 = vector.broadcast %cst_9 : f32 to vector<1x8x128xf32>
    %11 = arith.select %9, %6, %10 : vector<1x8x128xi1>, vector<1x8x128xf32>
    %cst_10 = arith.constant dense<0xFF800000> : vector<1x8xf32>
    %12 = vector.multi_reduction <maximumf>, %11, %cst_10 [2] : vector<1x8x128xf32> to vector<1x8xf32>
    %13 = vector.shape_cast %12 : vector<1x8xf32> to vector<1x8x1xf32>
    %14 = vector.broadcast %13 : vector<1x8x1xf32> to vector<1x8x128xf32>
    %15 = arith.subf %11, %14 : vector<1x8x128xf32>
    %16 = math.exp %15 : vector<1x8x128xf32>
    %cst_11 = arith.constant dense<0.000000e+00> : vector<1x8xf32>
    %17 = vector.multi_reduction <add>, %16, %cst_11 [2] : vector<1x8x128xf32> to vector<1x8xf32>
    %18 = vector.shape_cast %17 : vector<1x8xf32> to vector<1x8x1xf32>
    %19 = tpu.reciprocal %18 {approx = true} : vector<1x8x1xf32> -> vector<1x8x1xf32>
    %20 = vector.broadcast %19 : vector<1x8x1xf32> to vector<1x8x128xf32>
    %21 = arith.mulf %16, %20 : vector<1x8x128xf32>
    %c0_12 = arith.constant 0 : index
    %c0_13 = arith.constant 0 : index
    %c0_14 = arith.constant 0 : index
    %22 = vector.load %arg5[%c0_12, %c0_13, %c0_14] : memref<1x8x128xf32, #tpu.memory_space<vmem>>, vector<1x8x128xf32>
    %23 = arith.addf %21, %22 : vector<1x8x128xf32>
    %cst_15 = arith.constant 0.000000e+00 : f32
    %24 = vector.broadcast %cst_15 : f32 to vector<1x8x128xf32>
    %25 = arith.maximumf %23, %24 : vector<1x8x128xf32>
    %c0_16 = arith.constant 0 : index
    %c0_17 = arith.constant 0 : index
    %c0_18 = arith.constant 0 : index
    %26 = vector.load %arg6[%c0_16, %c0_17, %c0_18] : memref<1x8x128xf32, #tpu.memory_space<vmem>>, vector<1x8x128xf32>
    tpu.vector_store %arg6[%c0_16, %c0_17, %c0_18], %25 {strides = array<i32>} : memref<1x8x128xf32, #tpu.memory_space<vmem>>, vector<1x8x128xf32>,
    return
  }
  func.func @transform_0(%arg0: i32, %arg1: i32) -> (i32, i32, i32) {
    %c0_i32 = arith.constant 0 : i32
    %c0_i32_0 = arith.constant 0 : i32
    return %arg0, %arg1, %c0_i32 : i32, i32, i32
  }
  func.func @transform_1(%arg0: i32, %arg1: i32) -> (i32, i32, i32) {
    %c0_i32 = arith.constant 0 : i32
    %c0_i32_0 = arith.constant 0 : i32
    %c0_i32_1 = arith.constant 0 : i32
    return %arg0, %c0_i32, %c0_i32_0 : i32, i32, i32
  }
  func.func @transform_2(%arg0: i32, %arg1: i32) -> (i32, i32, i32) {
    %c0_i32 = arith.constant 0 : i32
    %c0_i32_0 = arith.constant 0 : i32
    return %arg0, %arg1, %c0_i32 : i32, i32, i32
  }
  func.func @transform_3(%arg0: i32, %arg1: i32) -> (i32, i32, i32) {
    %c0_i32 = arith.constant 0 : i32
    %c0_i32_0 = arith.constant 0 : i32
    return %arg0, %arg1, %c0_i32 : i32, i32, i32
  }
  func.func @transform_4(%arg0: i32, %arg1: i32) -> (i32, i32, i32) {
    %c0_i32 = arith.constant 0 : i32
    %c0_i32_0 = arith.constant 0 : i32
    return %arg0, %arg1, %c0_i32 : i32, i32, i32
  }
}

</mosaic_0001>

<bundles_post_ra>
// kernel: tpu_custom_call.1
= control target key start
LH: loop header
LB: loop body
LE: loop exit
PB: predicated region body
PF: predicated region fallthrough
CT: control target
= control target key end

     0   :  { %s1094_s0 = inlined_call_operand.hbm [shape: f32[2,8,32], index: 0, kind: input, shape index: {}]   ;;  %s1095_s1 = inlined_call_operand.hbm [shape: f32[2,32,128], index: 1, kind: input, shape index: {}]   ;;  %s1096_s2 = inlined_call_operand.hbm [shape: f32[2,8,128], index: 2, kind: input, shape index: {}]   ;;  %s1097_s3 = inlined_call_operand.hbm [shape: f32[2,8,128], index: 3, kind: input, shape index: {}]   ;;  %s1098_s4 = inlined_call_operand.hbm [shape: f32[2,8,128], index: 4, kind: output, shape index: {}]  }
   0x1   :  { %1104 = sst [smem:[#allocation20_spill]] %s1094_s0 }
   0x2   :  { %1105 = sst [smem:[#allocation21_spill]] %s1095_s1 }
   0x3   :  { %9 = vsyncpa [#allocation3], 0 }
   0x4   :  { %11 = vsyncpa [#allocation3 + $0x1], 0 }
   0x5   :  { %12 = vsyncpa [#allocation6], 0 }
   0x6   :  { %14 = vsyncpa [#allocation6 + $0x1], 0 }
   0x7   :  { %15 = vsyncpa [#allocation9], 0 }
   0x8   :  { %17 = vsyncpa [#allocation9 + $0x1], 0 }
   0x9   :  { %18 = vsyncpa [#allocation4], 0 }
   0xa   :  { %20 = vsyncpa [#allocation4 + $0x1], 0  ;;  %s916_s15 = smov 0   ;;  %s918_s16 = smov 0  }
   0xb   :  { %s920_s17 = smov 0   ;;  %s922_s18 = smov 0  }
   0xc   :  { %s924_s19 = smov 0   ;;  %s926_s20 = smov 0  }
   0xd LB: > { %1106 = sst [smem:[#allocation15_spill]] %s875_s17  ;;  %s947_s21 = sadd.s32 4294967295, %s887_s20   ;;  %s887_s20 = sphi %s926_s20, %s26_s20   ;;  %s883_s19 = sphi %s924_s19, %s1123_s19   ;;  %s879_s18 = sphi %s922_s18, %s1122_s18   ;;  %s875_s17 = sphi %s920_s17, %s1121_s17   ;;  %s871_s16 = sphi %s918_s16, %s1125_s16   ;;  %s867_s15 = sphi %s916_s15, %s1124_s15  }
   0xe   : > { %1107 = sst [smem:[#allocation16_spill]] %s883_s19  ;;  %s570_s22 = sadd.s32 4294967294, %s887_s20  }
   0xf   : > { %1108 = sst [smem:[#allocation17_spill]] %s887_s20  ;;  %s38_s23 = sadd.s32 1, %s883_s19 }
  0x10   : > { %s47_s24 = sadd.s32 1, %s875_s17  ;;  %p40_p0 = scmp.ge.s32.totalorder %s38_s23, 2 }
  0x11   : > { %p54_p1 = scmp.ne.s32.totalorder %s875_s17, %s871_s16  ;;  %p55_p2 = scmp.eq.s32.totalorder %s887_s20, 0 }
  0x12   : > { %p60_p3 = scmp.ne.s32.totalorder %s871_s16, %s867_s15  ;;  %s1127_s23 = smov (%p40_p0, %s38_s23), 0 }
  0x13   : > { %1109 = sst [smem:[#allocation18_spill]] %s1127_s23  ;;  %p959_p4 = por %p55_p2, %p54_p1 }
  0x14   : > { %p61_p5 = scmp.eq.s32.totalorder %s947_s21, 0  ;;  %s42_s26 = ssub.s32 %s883_s19, %s1127_s23 }
  0x15   : > { %p168_p6 = scmp.eq.s32.totalorder %s947_s21, 1  ;;  %p45_p7 = scmp.eq.s32.totalorder %s42_s26, 0 }
  0x16   : > { %p967_p8 = por %p61_p5, %p60_p3  ;;  %p174_p10 = scmp.eq.s32.totalorder %s570_s22, 1 }
  0x17   : > { %p971_p9 = por %p168_p6, %p54_p1  ;;  %p572_p12 = scmp.ge.s32.totalorder %s887_s20, 2 }
  0x18   : > { %s976_s29 = scalar_select %p45_p7, %s875_s17, %s47_s24  }
  0x19   : > { %p978_p11 = por %p174_p10, %p60_p3  ;;  %p621_p13 = scmp.lt.s32.totalorder %s887_s20, 2 }
  0x1a   : > { %1113 = sst [smem:[#allocation19_spill]] %s976_s29  ;;  %s985_s5 = sand.u32 1, %s875_s17  }
  0x1b   : > { %s214_s6 = sand.u32 1, %s887_s20   ;;  %s575_s7 = sshll.u32 %s985_s5, 5 }
  0x1c   : > { %p991_p0 = pnand %p621_p13, %p959_p4  ;;  %s593_s9 = sshll.u32 %s883_s19, 5 }
  0x1d   : > { %s1116_s1 = sld [smem:[#allocation21_spill]]  ;;  %s218_s14 = scalar_lea.vmem [#allocation5], %s575_s7 }
  0x1e   : > { %s226_s22 = sshll.u32 %s218_s14, 4  ;;  %s215_s24 = scalar_lea.sflag [#allocation6], %s214_s6  ;;  %s227_s22 = int_to_ptr.vmem [resolvable:$true] %s226_s22 }
  0x1f   : > { %s889_s25 = smov 128   ;;  %s890_s26 = smov 8  }
  0x20   : > { %p582_p1 = scmp.ge.s32.totalorder %s887_s20, 1  ;;  %p274_p2 = scmp.lt.s32.totalorder %s887_s20, 3 }
  0x21   : > { %s573_s10 = sshll.u32 %s985_s5, 3  ;;  %s1118_s0 = sld [smem:[#allocation20_spill]] }
  0x22   : > { %p1003_p3 = pnand %p582_p1, %p274_p2  ;;  %s198_s6 = scalar_lea.vmem [#allocation2], %s573_s10 }
  0x23   : > { %s223_s12 = scalar_lea.hbm %s1116_s1, %s593_s9  ;;  %s574_s9 = sshll.u32 %s883_s19, 3 }
  0x24   : > { %s224_s13 = sshll.u32 %s223_s12, 4  ;;  %s207_s1 = sshll.u32 %s198_s6, 4  ;;  %s225_s13 = int_to_ptr.hbm [resolvable:$true] %s224_s13  ;;  %s208_s1 = int_to_ptr.vmem [resolvable:$true] %s207_s1 }
  0x25   : > { %610 = dma.hbm_to_vmem [thread:$0]  (!%p991_p0), %s225_s13, 512, %s227_s22, %s215_s24, %s889_s25, %s889_s25, %s890_s26  }
  0x26   : > { %s195_s13 = scalar_lea.sflag [#allocation3], %s985_s5  ;;  %s245_s26 = scalar_lea.hbm %s1096_s2, %s574_s9 }
  0x27   : > { %s203_s12 = scalar_lea.hbm %s1118_s0, %s574_s9  ;;  %s247_s29 = sshll.u32 %s245_s26, 4  ;;  %s248_s29 = int_to_ptr.hbm [resolvable:$true] %s247_s29 }
  0x28   : > { %s205_s14 = sshll.u32 %s203_s12, 4  ;;  %s240_s19 = scalar_lea.vmem [#allocation7], %s573_s10  ;;  %s206_s14 = int_to_ptr.hbm [resolvable:$true] %s205_s14 }
  0x29   : > { %607 = dma.hbm_to_vmem [thread:$0]  (!%p991_p0), %s206_s14, 128, %s208_s1, %s195_s13  }
  0x2a   : > { %s249_s17 = sshll.u32 %s240_s19, 4  ;;  %s265_s12 = scalar_lea.hbm %s1097_s3, %s574_s9  ;;  %s250_s17 = int_to_ptr.vmem [resolvable:$true] %s249_s17 }
  0x2b   : > { %613 = dma.hbm_to_vmem [thread:$0]  (!%p991_p0), %s248_s29, 128, %s250_s17, %s215_s24  }
  0x2c   : > { %s260_s6 = scalar_lea.vmem [#allocation8], %s573_s10  ;;  %s267_s20 = sshll.u32 %s265_s12, 4  ;;  %s268_s20 = int_to_ptr.hbm [resolvable:$true] %s267_s20 }
  0x2d   : > { %s269_s0 = sshll.u32 %s260_s6, 4  ;;  %s257_s1 = scalar_lea.sflag [#allocation9], %s985_s5  ;;  %s270_s0 = int_to_ptr.vmem [resolvable:$true] %s269_s0 }
  0x2e   : > { %616 = dma.hbm_to_vmem [thread:$0]  (!%p991_p0), %s268_s20, 128, %s270_s0, %s257_s1  }
  0x2f   : > { %278 = sbr.rel (%p1003_p3) target bundleno = 457 (0x1c9), region = 36  ;;  %s1029_s19 = sand.u32 (!%p1003_p3), 1, %s871_s16  }
  0x30   : > { %s1032_s17 = sshll.u32 (!%p1003_p3), %s1029_s19, 3  ;;  %s281_s29 = scalar_lea.sflag (!%p1003_p3), [#allocation3], %s1029_s19 }
  0x31   : > { %s284_s24 = scalar_lea.vmem (!%p1003_p3), [#allocation2], %s1032_s17 }
  0x34   : > { %850 = dma.done.wait (%p967_p8), %s281_s29, 128  }
  0x35   : > { %852 = vsyncadd (%p967_p8), %s281_s29, 4294967168  ;;  %s290_s0 = sand.u32 1, %s947_s21   ;;  %s584_s20 = sshll.u32 %s1029_s19, 5 }
  0x36   : > { %s291_s23 = scalar_lea.sflag [#allocation6], %s290_s0  ;;  %s294_s5 = scalar_lea.vmem [#allocation5], %s584_s20 }
  0x37   : > { %854 = dma.done.wait (%p967_p8), %s291_s23, 640  }
  0x38   : > { %856 = vsyncadd (%p967_p8), %s291_s23, 4294966656  ;;  %s304_s8 = scalar_lea.vmem [#allocation7], %s1032_s17  ;;  %s311_s10 = scalar_lea.sflag [#allocation9], %s1029_s19 }
  0x39   : > { %s314_s9 = scalar_lea.vmem [#allocation8], %s1032_s17 }
  0x3a   : > { %858 = dma.done.wait (%p967_p8), %s311_s10, 128  }
  0x3b   : > { %860 = vsyncadd (%p967_p8), %s311_s10, 4294967168  ;;  %v359_v0 = vld [vmem:[%s294_s5 + $0x18] sm:$0xff]  ;;  %v358_v1 = vld [vmem:[%s294_s5 + $0x10] sm:$0xff]  ;;  %vm360_vm0 = vcmask 261120   ;;  %v387_v5 = vlaneseq  ;;  %s590_s21 = sshll.u32 %s879_s18, 3  ;;  %s354_s22 = scalar_lea.vmem [#allocation10], %s1032_s17 }
  0x3c   : > { %376 = vmatpush.msra.mxu0 %v359_v0  ;;  %v357_v2 = vld [vmem:[%s294_s5 + $0x8] sm:$0xff]  ;;  %v356_v3 = vld [vmem:[%s294_s5] sm:$0xff]  ;;  %v355_v4 = vld [vmem:[%s284_s24] sm:$0xff]  ;;  %s416_s13 = scalar_lea.hbm %s1098_s4, %s590_s21  ;;  %s418_s25 = sshll.u32 %s354_s22, 4  ;;  %s419_s25 = int_to_ptr.vmem [resolvable:$true] %s418_s25 }
  0x3d   : > { %v388_v6 = vand.u32 127, %v387_v5  ;;  %v385_v8 = vld [vmem:[%s304_s8] sm:$0xff]  ;;  %v400_v18 = vld [vmem:[%s314_s9] sm:$0xff]  ;;  %s420_s26 = sshll.u32 %s416_s13, 4  ;;  %s405_s7 = scalar_lea.sflag [#allocation4], %s1029_s19  ;;  %s421_s26 = int_to_ptr.hbm [resolvable:$true] %s420_s26 }
  0x3e   : > { %377 = vmatpush.msra.mxu0 %v358_v1  ;;  %s811_s11 = sshra.s32 %s421_s26, 4  ;;  %s817_s1 = scalar_lea.hbm %s1098_s4, 16  ;;  %s812_s11 = int_to_ptr.hbm [resolvable:$true] %s811_s11 }
  0x3f   : > { %vm389_vm1 = vcmp.lt.s32.totalorder %v388_v6, 8  ;;  %s813_s18 = scalar_lea.hbm %s812_s11, 8  ;;  %p818_p7 = scmp.lt.s32.totalorder %s812_s11, %s1098_s4 }
  0x40   : > { %378 = vmatpush.msra.mxu0 %v357_v2  ;;  %p814_p4 = scmp.ne.s32.totalorder %s812_s11, %s813_s18  ;;  %p819_p8 = scmp.lt.s32.totalorder %s817_s1, %s813_s18 }
  0x42   : > { %379 = vmatpush.msra.mxu0 %v356_v3  ;;  %p815_p5 = pnand %p814_p4, %p971_p9  ;;  %p820_p10 = por %p819_p8, %p818_p7 }
  0x43   : > { %588 = vmatmul.msk.f32.vlgmr.msra.gmra.mxu0 %vm360_vm0, %v355_v4 }
  0x44   : > { %p816_p6 = pneg %p815_p5 }
  0x46   : > { %p821_p13 = pnand %p820_p10, %p816_p6 }
  0xc0   : > { %v381_v7 = vpop.f32.mrf.mxu0 }
  0xc1   : > { %v384_v9 = vmul.f32 0.17677669, %v381_v7 }
  0xc3   : > { %v386_v10 = vadd.f32 %v385_v8, %v384_v9 }
  0xc5   : > { %v390_v11 = vsel %vm389_vm1, %v386_v10, -1e+30 }
  0xc6   : > { %391 = vmax.xlane.f32.xlu0 %v390_v11 }
 0x139   : > { %v392_v12 = vpop.xlane.xlu0 %391 }
 0x13a   : > { %v393_v13 = vsub.f32 %v390_v11, %v392_v12 }
 0x13c   : > { %v394_v14 = vmul.f32 1.442695, %v393_v13 }
 0x13e   : > { %673 = vpow2.f32 %v394_v14 }
 0x144   : > { %v674_v15 = vpop.eup %673 }
 0x145   : > { %396 = vadd.xlane.f32.xlu0 %v674_v15 }
 0x1b8   : > { %v397_v16 = vpop.xlane.xlu0 %396 }
 0x1b9   : > { %675 = vrcp.f32 %v397_v16 }
 0x1bf   : > { %v676_v17 = vpop.eup %675 }
 0x1c0   : > { %v399_v19 = vmul.f32 %v676_v17, %v674_v15 }
 0x1c2   : > { %v401_v20 = vadd.f32 %v400_v18, %v399_v19 }
 0x1c4   : > { %v402_v21 = vmax.f32 %v401_v20, 0.0 }
 0x1c6   : > { %403 = vst [vmem:[%s354_s22] sm:$0xff] %v402_v21 }
 0x1c7   : > { %824 = shalt.err (!%p821_p13)
}
 0x1c8   : > { %602 = dma.vmem_to_hbm [thread:$0]  (%p971_p9), %s419_s25, 128, %s421_s26, %s405_s7  }
 0x1c9 PF: > { %s1119_s19 = sld [smem:[#allocation17_spill]]  ;;  %s432_s24 = sand.u32 1, %s867_s15  }
 0x1ca   : > { %p618_p0 = pnand %p572_p12, %p978_p11  ;;  %s433_s0 = scalar_lea.sflag [#allocation4], %s432_s24 }
 0x1cc   : > { %p619_p1 = pneg %p618_p0 }
 0x1ce   : > { %862 = dma.done.wait (%p619_p1), %s433_s0, 128  }
 0x1cf   : > { %864 = vsyncadd (%p619_p1), %s433_s0, 4294967168  ;;  %s26_s20 = sadd.s32 1, %s1119_s19   ;;  %s1120_s23 = sld [smem:[#allocation15_spill]] }
 0x1d0   : > { %p23_p2 = scmp.ge.s32.totalorder %s26_s20, 4   ;;  %s1121_s17 = sld [smem:[#allocation19_spill]] }
 0x1d1   : > { %s1122_s18 = sld [smem:[#allocation16_spill]]  ;;  %s1124_s15 = smov %s871_s16 }
 0x1d2   : > { %s1123_s19 = sld [smem:[#allocation18_spill]]  ;;  %25 = sbr.rel (!%p23_p2) target bundleno = 13 (0xd), region = 118 }
 0x1d5   : > { %s1125_s16 = smov %s1120_s23 }
 0x1d7   :  { %439 = vsyncpa [#allocation3], 1 }
 0x1d8   :  { %441 = vsyncpa [#allocation3 + $0x1], 1 }
 0x1d9   :  { %442 = vsyncpa [#allocation6], 1 }
 0x1da   :  { %444 = vsyncpa [#allocation6 + $0x1], 1 }
 0x1db   :  { %445 = vsyncpa [#allocation9], 1 }
 0x1dc   :  { %447 = vsyncpa [#allocation9 + $0x1], 1 }
 0x1dd   :  { %448 = vsyncpa [#allocation4], 1 }
 0x1de   :  { %450 = vsyncpa [#allocation4 + $0x1], 1 }

</bundles_post_ra>
